<compile_context>
chip_gen: v5e
topology: v5e:2x2
jax: 0.10.0
libtpu: 0.0.40
codegen_flags: <defaults>
</compile_context>

<pallas_src>
import functools
import math

import jax
import jax.numpy as jnp
from jax.experimental import pallas as pl
from jax.experimental.pallas import tpu as pltpu

_PI_CONST = 3.14159265  # same constant the PyTorch module uses


def _round_up(v, mult):
    return ((v + mult - 1) // mult) * mult


def _sphereface_kernel(x_ref, w_ref, winv_ref, label_ref, out_ref,
                       *, m, inv_one_plus_lamb, tile_c):
    x = x_ref[...]            # (TILE_B, D) f32
    w = w_ref[...]            # (TILE_C, D) f32
    w_inv = winv_ref[...]     # (1, TILE_C) f32 : 1 / max(||w_c||, 1e-12)
    lab = label_ref[...]      # (TILE_B, 1) int32

    # ||x|| per row.  F.normalize uses x / max(||x||, 1e-12); rsqrt of the
    # clamped sum-of-squares is exactly 1 / max(||x||, 1e-12).
    ss = jnp.sum(x * x, axis=1, keepdims=True)          # (TILE_B, 1)
    x_norm = jnp.sqrt(ss)                                # ||x|| (final scale)
    x_inv = jax.lax.rsqrt(jnp.maximum(ss, 1e-24))        # (TILE_B, 1)

    # Raw dot on the MXU, contracting the last dim of both operands
    # (no transposed weight tile is materialized).
    raw = jax.lax.dot_general(
        x, w,
        dimension_numbers=(((1,), (1,)), ((), ())),
        preferred_element_type=jnp.float32)              # (TILE_B, TILE_C)

    # cos_theta = normalize(x) @ normalize(W)^T, via post-matmul scaling.
    cos = raw * x_inv * w_inv
    cos = jnp.clip(cos, -1.0, 1.0)

    # mlambda[4]: cos(4*theta) = 8 c^4 - 8 c^2 + 1
    c2 = cos * cos
    cos_m_theta = 8.0 * c2 * c2 - 8.0 * c2 + 1.0

    # k = floor(m * acos(cos) / pi_const).  acos is monotone decreasing, so
    # floor() equals the number of angular thresholds crossed:
    #   k = sum_j [cos <= cos(j * pi_const / m)],  j = 1..m.
    # Parity (-1)^k is accumulated from the same compares (no f32 mod).
    k = jnp.zeros_like(cos)
    sign = jnp.ones_like(cos)
    for j in range(1, m + 1):
        thr = jnp.float32(math.cos(j * _PI_CONST / m))
        crossed = cos <= thr
        k = k + crossed.astype(jnp.float32)
        sign = jnp.where(crossed, -sign, sign)

    phi_theta = sign * cos_m_theta - 2.0 * k

    # one_hot.scatter_(1, label, 1) -- iota offset by this C tile's origin.
    col0 = pl.program_id(1) * tile_c
    classes = col0 + jax.lax.broadcasted_iota(jnp.int32, cos.shape, 1)
    one_hot = (classes == lab).astype(jnp.float32)

    out = one_hot * (phi_theta - cos) * jnp.float32(inv_one_plus_lamb) + cos
    out_ref[...] = out * x_norm       # NormOfFeature.view(-1, 1)


def sphereface_forward(x, weight, label, *, m=4, iter_count=1,
                       base=1000.0, gamma=0.12, power=1, lambda_min=5.0):
    """x: (B, D) f32, weight: (C, D) f32, label: (B,) int32 -> (B, C) f32."""
    assert m == 4, "only m=4 (default) polynomial is implemented"
    lamb = max(lambda_min, base * (1.0 + gamma * iter_count) ** (-power))

    B, D = x.shape
    C, D2 = weight.shape
    assert D == D2

    # Generation-safe tile sizes: biggest that comfortably fits the 32 MiB
    # scoped VMEM default (also fine under v7x's 64 MiB physical VMEM),
    # lane-dense (128-multiple) on the class axis, 8-multiple on the batch
    # axis, D kept whole per block.
    TILE_B = min(256, _round_up(B, 8))
    TILE_C = min(1024, _round_up(C, 128))
    Bp = _round_up(B, TILE_B)
    Cp = _round_up(C, TILE_C)

    x_p = jnp.pad(x.astype(jnp.float32), ((0, Bp - B), (0, 0)))
    w_p = jnp.pad(weight.astype(jnp.float32), ((0, Cp - C), (0, 0)))
    label_p = jnp.pad(label.astype(jnp.int32), (0, Bp - B),
                      constant_values=-1).reshape(Bp, 1)

    # Per-class inverse norms, computed ONCE (not per B-tile) and fed to the
    # kernel as a lane-dense (1, C) row -> cos columns are scaled after the
    # matmul instead of normalizing the whole (TILE_C, D) weight tile.
    w_ss = jnp.sum(w_p * w_p, axis=1)
    w_inv = jax.lax.rsqrt(jnp.maximum(w_ss, 1e-24)).reshape(1, Cp)

    grid = (Bp // TILE_B, Cp // TILE_C)  # C is the inner axis: x block reused

    kernel = functools.partial(
        _sphereface_kernel, m=m,
        inv_one_plus_lamb=float(1.0 / (1.0 + lamb)), tile_c=TILE_C)

    # Double-buffered input/output tiles + headroom.
    vmem_bytes = 4 * 2 * (TILE_B * D + TILE_C * D + TILE_B * TILE_C
                          + TILE_C + TILE_B)
    vmem_limit = max(vmem_bytes + (4 << 20), 16 << 20)

    cost = pl.CostEstimate(
        flops=2 * Bp * Cp * D,
        transcendentals=Bp + Cp,
        bytes_accessed=4 * (Bp * D + Cp * D + Bp * Cp))

    out_p = pl.pallas_call(
        kernel,
        out_shape=jax.ShapeDtypeStruct((Bp, Cp), jnp.float32),
        grid_spec=pltpu.PrefetchScalarGridSpec(
            num_scalar_prefetch=0,
            grid=grid,
            in_specs=[
                pl.BlockSpec((TILE_B, D), lambda i, j: (i, 0)),   # x
                pl.BlockSpec((TILE_C, D), lambda i, j: (j, 0)),   # weight
                pl.BlockSpec((1, TILE_C), lambda i, j: (0, j)),   # w_inv_norm
                pl.BlockSpec((TILE_B, 1), lambda i, j: (i, 0)),   # label
            ],
            out_specs=pl.BlockSpec((TILE_B, TILE_C), lambda i, j: (i, j)),
        ),
        compiler_params=pltpu.CompilerParams(
            dimension_semantics=("parallel", "parallel"),
            vmem_limit_bytes=int(vmem_limit),
        ),
        cost_estimate=cost,
    )(x_p, w_p, w_inv, label_p)

    return out_p[:B, :C]


def _reference(x, weight, label, *, m=4, iter_count=1):
    lamb = max(5.0, 1000.0 * (1.0 + 0.12 * iter_count) ** (-1))
    xn = x / jnp.maximum(jnp.linalg.norm(x, axis=1, keepdims=True), 1e-12)
    wn = weight / jnp.maximum(jnp.linalg.norm(weight, axis=1, keepdims=True), 1e-12)
    cos = jnp.clip(xn @ wn.T, -1.0, 1.0)
    cos_m = 8.0 * cos ** 4 - 8.0 * cos ** 2 + 1.0
    theta = jnp.arccos(cos)
    k = jnp.floor(m * theta / _PI_CONST)
    phi = (-1.0) ** k * cos_m - 2.0 * k
    norm = jnp.linalg.norm(x, axis=1, keepdims=True)
    one_hot = jax.nn.one_hot(label, weight.shape[0], dtype=jnp.float32)
    return (one_hot * (phi - cos) / (1.0 + lamb) + cos) * norm


if __name__ == "__main__":
    B, D, C = 8, 32, 16  # batch, in_features, out_features

    key = jax.random.PRNGKey(0)
    kx, kw, kl = jax.random.split(key, 3)

    x = jax.random.normal(kx, (B, D), dtype=jnp.float32)

    # xavier_uniform_ init for weight (out_features, in_features)
    bound = math.sqrt(6.0 / (D + C))
    weight = jax.random.uniform(kw, (C, D), dtype=jnp.float32,
                                minval=-bound, maxval=bound)

    label = jax.random.randint(kl, (B,), 0, C, dtype=jnp.int32)

    out = sphereface_forward(x, weight, label, m=4, iter_count=1)
    out = jax.block_until_ready(out)

    ref = _reference(x, weight, label, m=4, iter_count=1)
    assert out.shape == (B, C)
    assert jnp.allclose(out, ref, atol=1e-4, rtol=1e-4), "mismatch vs reference"

    print("KERNEL_OK")
</pallas_src>

<mosaic_0001>
module attributes {stable_mosaic.version = 11 : i64} {
  func.func @_sphereface_kernel(%arg0: i32, %arg1: i32, %arg2: memref<8x32xf32, #tpu.memory_space<vmem>>, %arg3: memref<128x32xf32, #tpu.memory_space<vmem>>, %arg4: memref<1x128xf32, #tpu.memory_space<vmem>>, %arg5: memref<8x1xi32, #tpu.memory_space<vmem>>, %arg6: memref<8x128xf32, #tpu.memory_space<vmem>>) attributes {dimension_semantics = [#tpu.dimension_semantics<parallel>, #tpu.dimension_semantics<parallel>], iteration_bounds = array<i64: 1, 1>, scalar_prefetch = 0 : i64, scratch_operands = 0 : i64, tpu.core_type = #tpu.core_type<tc>, window_params = [{transform_indices = @transform_0, window_bounds = array<i64: 8, 32>}, {transform_indices = @transform_1, window_bounds = array<i64: 128, 32>}, {transform_indices = @transform_2, window_bounds = array<i64: 1, 128>}, {transform_indices = @transform_3, window_bounds = array<i64: 8, 1>}, {transform_indices = @transform_4, window_bounds = array<i64: 8, 128>}]} {
    %c0 = arith.constant 0 : index
    %c0_0 = arith.constant 0 : index
    %0 = vector.load %arg2[%c0, %c0_0] : memref<8x32xf32, #tpu.memory_space<vmem>>, vector<8x32xf32>
    %c0_1 = arith.constant 0 : index
    %c0_2 = arith.constant 0 : index
    %1 = vector.load %arg3[%c0_1, %c0_2] : memref<128x32xf32, #tpu.memory_space<vmem>>, vector<128x32xf32>
    %c0_3 = arith.constant 0 : index
    %c0_4 = arith.constant 0 : index
    %2 = vector.load %arg4[%c0_3, %c0_4] : memref<1x128xf32, #tpu.memory_space<vmem>>, vector<1x128xf32>
    %c0_5 = arith.constant 0 : index
    %c0_6 = arith.constant 0 : index
    %3 = vector.load %arg5[%c0_5, %c0_6] : memref<8x1xi32, #tpu.memory_space<vmem>>, vector<8x1xi32>
    %4 = arith.mulf %0, %0 : vector<8x32xf32>
    %cst = arith.constant dense<0.000000e+00> : vector<8xf32>
    %5 = vector.multi_reduction <add>, %4, %cst [1] : vector<8x32xf32> to vector<8xf32>
    %6 = vector.shape_cast %5 : vector<8xf32> to vector<8x1xf32>
    %7 = math.sqrt %6 : vector<8x1xf32>
    %cst_7 = arith.constant 1.000000e-24 : f32
    %8 = vector.broadcast %cst_7 : f32 to vector<8x1xf32>
    %9 = arith.maximumf %6, %8 : vector<8x1xf32>
    %10 = math.rsqrt %9 : vector<8x1xf32>
    %cst_8 = arith.constant dense<0.000000e+00> : vector<8x128xf32>
    %11 = tpu.matmul %0, %1, %cst_8 {dimension_numbers = #tpu.dot_dimension_numbers<[1], [1], [0], [0], [0, 0, 1, 0], [], []>} : vector<8x32xf32>, vector<128x32xf32>, vector<8x128xf32> -> vector<8x128xf32>
    %12 = vector.broadcast %10 : vector<8x1xf32> to vector<8x128xf32>
    %13 = arith.mulf %11, %12 : vector<8x128xf32>
    %14 = vector.broadcast %2 : vector<1x128xf32> to vector<8x128xf32>
    %15 = arith.mulf %13, %14 : vector<8x128xf32>
    %cst_9 = arith.constant -1.000000e+00 : f32
    %cst_10 = arith.constant 1.000000e+00 : f32
    %16 = vector.broadcast %cst_9 : f32 to vector<8x128xf32>
    %17 = arith.maximumf %16, %15 : vector<8x128xf32>
    %18 = vector.broadcast %cst_10 : f32 to vector<8x128xf32>
    %19 = arith.minimumf %18, %17 : vector<8x128xf32>
    %20 = arith.mulf %19, %19 : vector<8x128xf32>
    %cst_11 = arith.constant 8.000000e+00 : f32
    %21 = vector.broadcast %cst_11 : f32 to vector<8x128xf32>
    %22 = arith.mulf %21, %20 : vector<8x128xf32>
    %23 = arith.mulf %22, %20 : vector<8x128xf32>
    %cst_12 = arith.constant 8.000000e+00 : f32
    %24 = vector.broadcast %cst_12 : f32 to vector<8x128xf32>
    %25 = arith.mulf %24, %20 : vector<8x128xf32>
    %26 = arith.subf %23, %25 : vector<8x128xf32>
    %cst_13 = arith.constant 1.000000e+00 : f32
    %27 = vector.broadcast %cst_13 : f32 to vector<8x128xf32>
    %28 = arith.addf %26, %27 : vector<8x128xf32>
    %cst_14 = arith.constant 0.000000e+00 : f32
    %29 = vector.broadcast %cst_14 : f32 to vector<8x128xf32>
    %cst_15 = arith.constant 1.000000e+00 : f32
    %30 = vector.broadcast %cst_15 : f32 to vector<8x128xf32>
    %cst_16 = arith.constant 0.707106769 : f32
    %31 = vector.broadcast %cst_16 : f32 to vector<8x128xf32>
    %32 = arith.cmpf ole, %19, %31 : vector<8x128xf32>
    %33 = arith.extui %32 : vector<8x128xi1> to vector<8x128xi32>
    %34 = arith.sitofp %33 : vector<8x128xi32> to vector<8x128xf32>
    %35 = arith.addf %29, %34 : vector<8x128xf32>
    %cst_17 = arith.constant 0.000000e+00 : f32
    %36 = vector.broadcast %cst_17 : f32 to vector<8x128xf32>
    %37 = arith.subf %36, %30 : vector<8x128xf32>
    %38 = arith.select %32, %37, %30 : vector<8x128xi1>, vector<8x128xf32>
    %cst_18 = arith.constant 1.79489656E-9 : f32
    %39 = vector.broadcast %cst_18 : f32 to vector<8x128xf32>
    %40 = arith.cmpf ole, %19, %39 : vector<8x128xf32>
    %41 = arith.extui %40 : vector<8x128xi1> to vector<8x128xi32>
    %42 = arith.sitofp %41 : vector<8x128xi32> to vector<8x128xf32>
    %43 = arith.addf %35, %42 : vector<8x128xf32>
    %cst_19 = arith.constant 0.000000e+00 : f32
    %44 = vector.broadcast %cst_19 : f32 to vector<8x128xf32>
    %45 = arith.subf %44, %38 : vector<8x128xf32>
    %46 = arith.select %40, %45, %38 : vector<8x128xi1>, vector<8x128xf32>
    %cst_20 = arith.constant -0.707106769 : f32
    %47 = vector.broadcast %cst_20 : f32 to vector<8x128xf32>
    %48 = arith.cmpf ole, %19, %47 : vector<8x128xf32>
    %49 = arith.extui %48 : vector<8x128xi1> to vector<8x128xi32>
    %50 = arith.sitofp %49 : vector<8x128xi32> to vector<8x128xf32>
    %51 = arith.addf %43, %50 : vector<8x128xf32>
    %cst_21 = arith.constant 0.000000e+00 : f32
    %52 = vector.broadcast %cst_21 : f32 to vector<8x128xf32>
    %53 = arith.subf %52, %46 : vector<8x128xf32>
    %54 = arith.select %48, %53, %46 : vector<8x128xi1>, vector<8x128xf32>
    %cst_22 = arith.constant -1.000000e+00 : f32
    %55 = vector.broadcast %cst_22 : f32 to vector<8x128xf32>
    %56 = arith.cmpf ole, %19, %55 : vector<8x128xf32>
    %57 = arith.extui %56 : vector<8x128xi1> to vector<8x128xi32>
    %58 = arith.sitofp %57 : vector<8x128xi32> to vector<8x128xf32>
    %59 = arith.addf %51, %58 : vector<8x128xf32>
    %cst_23 = arith.constant 0.000000e+00 : f32
    %60 = vector.broadcast %cst_23 : f32 to vector<8x128xf32>
    %61 = arith.subf %60, %54 : vector<8x128xf32>
    %62 = arith.select %56, %61, %54 : vector<8x128xi1>, vector<8x128xf32>
    %63 = arith.mulf %62, %28 : vector<8x128xf32>
    %cst_24 = arith.constant 2.000000e+00 : f32
    %64 = vector.broadcast %cst_24 : f32 to vector<8x128xf32>
    %65 = arith.mulf %64, %59 : vector<8x128xf32>
    %66 = arith.subf %63, %65 : vector<8x128xf32>
    %c128_i32 = arith.constant 128 : i32
    %67 = arith.muli %arg1, %c128_i32 : i32
    %68 = tpu.iota {dimensions = array<i32: 1>} : vector<8x128xi32>
    %69 = vector.broadcast %67 : i32 to vector<8x128xi32>
    %70 = arith.addi %69, %68 : vector<8x128xi32>
    %71 = vector.broadcast %3 : vector<8x1xi32> to vector<8x128xi32>
    %72 = arith.cmpi eq, %70, %71 : vector<8x128xi32>
    %73 = arith.extui %72 : vector<8x128xi1> to vector<8x128xi32>
    %74 = arith.sitofp %73 : vector<8x128xi32> to vector<8x128xf32>
    %75 = arith.subf %66, %19 : vector<8x128xf32>
    %76 = arith.mulf %74, %75 : vector<8x128xf32>
    %cst_25 = arith.constant 0.00111874705 : f32
    %77 = vector.broadcast %cst_25 : f32 to vector<8x128xf32>
    %78 = arith.mulf %76, %77 : vector<8x128xf32>
    %79 = arith.addf %78, %19 : vector<8x128xf32>
    %80 = vector.broadcast %7 : vector<8x1xf32> to vector<8x128xf32>
    %81 = arith.mulf %79, %80 : vector<8x128xf32>
    %c0_26 = arith.constant 0 : index
    %c0_27 = arith.constant 0 : index
    %82 = vector.load %arg6[%c0_26, %c0_27] : memref<8x128xf32, #tpu.memory_space<vmem>>, vector<8x128xf32>
    tpu.vector_store %arg6[%c0_26, %c0_27], %81 {strides = array<i32>} : memref<8x128xf32, #tpu.memory_space<vmem>>, vector<8x128xf32>,
    return
  }
  func.func @transform_0(%arg0: i32, %arg1: i32) -> (i32, i32) {
    %c0_i32 = arith.constant 0 : i32
    %c0_i32_0 = arith.constant 0 : i32
    return %arg0, %c0_i32 : i32, i32
  }
  func.func @transform_1(%arg0: i32, %arg1: i32) -> (i32, i32) {
    %c0_i32 = arith.constant 0 : i32
    %c0_i32_0 = arith.constant 0 : i32
    return %arg1, %c0_i32 : i32, i32
  }
  func.func @transform_2(%arg0: i32, %arg1: i32) -> (i32, i32) {
    %c0_i32 = arith.constant 0 : i32
    %c0_i32_0 = arith.constant 0 : i32
    return %c0_i32, %arg1 : i32, i32
  }
  func.func @transform_3(%arg0: i32, %arg1: i32) -> (i32, i32) {
    %c0_i32 = arith.constant 0 : i32
    %c0_i32_0 = arith.constant 0 : i32
    return %arg0, %c0_i32 : i32, i32
  }
  func.func @transform_4(%arg0: i32, %arg1: i32) -> (i32, i32) {
    %c0_i32 = arith.constant 0 : i32
    return %arg0, %arg1 : i32, i32
  }
}

</mosaic_0001>

<bundles_post_ra>
// kernel: tpu_custom_call.1
= control target key start
LH: loop header
LB: loop body
LE: loop exit
PB: predicated region body
PF: predicated region fallthrough
CT: control target
= control target key end

     0   :  { %vm38_vm0 = vcmask 261120   ;;  %s387_s0 = inlined_call_operand.vmem [shape: f32[8,32], index: 0, kind: input, shape index: {}]   ;;  %s388_s1 = inlined_call_operand.vmem [shape: f32[128,32], index: 1, kind: input, shape index: {}]   ;;  %s389_s2 = inlined_call_operand.vmem [shape: f32[1,128], index: 2, kind: input, shape index: {}]   ;;  %s390_s3 = inlined_call_operand.vmem [shape: s32[8,1], index: 3, kind: input, shape index: {}]   ;;  %s391_s4 = inlined_call_operand.hbm [shape: f32[8,128], index: 4, kind: output, shape index: {}]  }
   0x1   :  { %v34_v0 = vld [vmem:[%s388_s1 + $0x78] sm:$0xff]  ;;  %v33_v1 = vld [vmem:[%s388_s1 + $0x70] sm:$0xff]  ;;  %v18_v2 = vld [vmem:[%s387_s0] sm:$0xff] }
   0x2   :  { %207 = vmatpush.xpose.msk.msra.mxu0 %vm38_vm0, %v34_v0  ;;  %v37_v3 = vmul.f32 %v18_v2, %v18_v2 }
   0x3   :  { %9 = vsyncpa [#allocation3], 0  ;;  %v32_v4 = vld [vmem:[%s388_s1 + $0x68] sm:$0xff]  ;;  %v31_v6 = vld [vmem:[%s388_s1 + $0x60] sm:$0xff]  ;;  %v266_v13 = vmov 0   ;;  %v267_v39 = vmov 0.0   ;;  %v175_v48 = vlaneseq }
   0x4   :  { %v39_v5 = vsel %vm38_vm0, %v37_v3, 0.0  ;;  %v30_v7 = vld [vmem:[%s388_s1 + $0x58] sm:$0xff]  ;;  %v29_v8 = vld [vmem:[%s388_s1 + $0x50] sm:$0xff]  ;;  %v28_v9 = vld [vmem:[%s388_s1 + $0x48] sm:$0xff]  ;;  %234 = vset.pattern.permute.xlu0 %v266_v13  ;;  %v268_v41 = vmov 1.0   ;;  %s198_s26 = sshll.u32 %s391_s4, 4  ;;  %s199_s26 = int_to_ptr.hbm [resolvable:$true] %s198_s26 }
   0x5   :  { %40 = vadd.xlane.f32.xlu0 %v39_v5  ;;  %v27_v10 = vld [vmem:[%s388_s1 + $0x40] sm:$0xff]  ;;  %v26_v11 = vld [vmem:[%s388_s1 + $0x38] sm:$0xff]  ;;  %v25_v14 = vld [vmem:[%s388_s1 + $0x30] sm:$0xff]  ;;  %v176_v58 = vand.u32 127, %v175_v48 }
   0x6   :  { %208 = vmatpush.xpose.msk.msra.mxu0 %vm38_vm0, %v33_v1  ;;  %v36_v12 = vld [vmem:[%s390_s3] sm:$0xff]  ;;  %v24_v15 = vld [vmem:[%s388_s1 + $0x28] sm:$0xff]  ;;  %v22_v17 = vld [vmem:[%s388_s1 + $0x18] sm:$0xff] }
   0x7   :  { %v23_v16 = vld [vmem:[%s388_s1 + $0x20] sm:$0xff]  ;;  %v21_v18 = vld [vmem:[%s388_s1 + $0x10] sm:$0xff]  ;;  %v20_v19 = vld [vmem:[%s388_s1 + $0x8] sm:$0xff] }
   0x8   :  { %v19_v20 = vld [vmem:[%s388_s1] sm:$0xff] }
   0x9   :  { %v235_v30 = vld [vmem:[%s389_s2] ss:$0 sm:$0xff]  ;;  %s269_s2 = smov [#allocation2]  }
   0xa   :  { %209 = vmatpush.xpose.msk.msra.mxu0 %vm38_vm0, %v32_v4  ;;  %s196_s24 = sshll.u32 %s269_s2, 4  ;;  %s197_s24 = int_to_ptr.vmem [resolvable:$true] %s196_s24 }
   0xe   :  { %210 = vmatpush.xpose.msk.msra.mxu0 %vm38_vm0, %v31_v6 }
  0x12   :  { %211 = vmatpush.xpose.msk.msra.mxu0 %vm38_vm0, %v30_v7 }
  0x16   :  { %212 = vmatpush.xpose.msk.msra.mxu0 %vm38_vm0, %v29_v8 }
  0x19   :  { %180 = vperm.xlu0 %234, %v36_v12  }
  0x1a   :  { %213 = vmatpush.xpose.msk.msra.mxu0 %vm38_vm0, %v28_v9 }
  0x1e   :  { %214 = vmatpush.xpose.msk.msra.mxu0 %vm38_vm0, %v27_v10 }
  0x22   :  { %215 = vmatpush.xpose.msk.msra.mxu0 %vm38_vm0, %v26_v11 }
  0x26   :  { %216 = vmatpush.xpose.msk.msra.mxu0 %vm38_vm0, %v25_v14 }
  0x2a   :  { %217 = vmatpush.xpose.msk.msra.mxu0 %vm38_vm0, %v24_v15 }
  0x2e   :  { %218 = vmatpush.xpose.msk.msra.mxu0 %vm38_vm0, %v23_v16 }
  0x32   :  { %219 = vmatpush.xpose.msk.msra.mxu0 %vm38_vm0, %v22_v17 }
  0x36   :  { %220 = vmatpush.xpose.msk.msra.mxu0 %vm38_vm0, %v21_v18 }
  0x3a   :  { %221 = vmatpush.xpose.msk.msra.mxu0 %vm38_vm0, %v20_v19 }
  0x3e   :  { %222 = vmatpush.xpose.msk.msra.mxu0 %vm38_vm0, %v19_v20 }
  0x41   :  { %223 = vmatmul.msk.f32.vlgmr.msra.gmra.mxu0 %vm38_vm0, %v18_v2 }
  0x78   :  { %v367_v21 = vpop.xlane.xlu0 %40 }
  0x79   :  { %v54_v22 = vmax.f32 %v367_v21, 1e-24  ;;  %vm49_vm9 = vcmp.eq.f32.partialorder %v367_v21, inf  ;;  %v52_v8 = vand.u32 2147483648, %v367_v21  ;;  %vm51_vm10 = vcmp.eq.f32.partialorder %v367_v21, 0.0 }
  0x7b   :  { %236 = vrsqrt.f32 %v54_v22  ;;  %vm61_vm1 = vweird.f32 %v54_v22 }
  0x7c   :  { %238 = vrsqrt.f32 %v367_v21 }
  0x81   :  { %v237_v23 = vpop.eup %236 }
  0x82   :  { %v56_v24 = vmul.f32 %v237_v23, %v54_v22  ;;  %vm62_vm2 = vweird.f32 %v237_v23  ;;  %v239_v29 = vpop.eup %238 }
  0x83   :  { %vm63_vm3 = vmor %vm61_vm1, %vm62_vm2  ;;  %v43_v34 = vmul.f32 %v239_v29, %v367_v21 }
  0x84   :  { %v57_v25 = vmul.f32 %v237_v23, %v56_v24 }
  0x85   :  { %v44_v37 = vmul.f32 %v239_v29, %v43_v34 }
  0x86   :  { %v58_v26 = vmul.f32 0.5, %v57_v25 }
  0x87   :  { %v45_v49 = vmul.f32 0.5, %v44_v37 }
  0x88   :  { %v59_v27 = vsub.f32 1.5, %v58_v26 }
  0x89   :  { %v46_v59 = vsub.f32 1.5, %v45_v49 }
  0x8a   :  { %v60_v28 = vmul.f32 %v237_v23, %v59_v27 }
  0x8b   :  { %v181_v62 = vpop.permute.xlu0 %180  ;;  %v47_v2 = vmul.f32 %v239_v29, %v46_v59 }
  0x8c   :  { %v64_v31 = vsel %vm63_vm3, %v237_v23, %v60_v28  ;;  %vm182_vm8 = vcmp.eq.s32.totalorder %v176_v58, %v181_v62 }
  0x8d   :  { %v229_v4 = vsel %vm182_vm8, 1.0, %v267_v39  ;;  %v48_v6 = vmul.f32 %v47_v2, %v367_v21 }
  0x8f   :  { %v50_v10 = vsel %vm49_vm9, %v367_v21, %v48_v6 }
  0x90   :  { %v53_v12 = vsel %vm51_vm10, %v52_v8, %v50_v10 }
  0xbe   :  { %v133_v32 = vpop.f32.mrf.mxu0 }
  0xbf   :  { %v136_v33 = vmul.f32 %v133_v32, %v64_v31 }
  0xc1   :  { %v140_v35 = vmul.f32 %v235_v30, %v136_v33 }
  0xc3   :  { %v224_v36 = vclamps-f32 %v140_v35, 1.0 }
  0xc5   :  { %v143_v38 = vmul.f32 %v224_v36, %v224_v36  ;;  %vm148_vm4 = vcmp.le.f32.partialorder %v224_v36, 0.70710677  ;;  %vm153_vm5 = vcmp.le.f32.partialorder %v224_v36, 1.7948966e-09  ;;  %vm159_vm6 = vcmp.le.f32.partialorder %v224_v36, -0.70710677 }
  0xc6   :  { %v225_v40 = vsel %vm148_vm4, 1.0, %v267_v39  ;;  %v152_v42 = vsel %vm148_vm4, -1.0, %v268_v41  ;;  %v226_v43 = vsel %vm153_vm5, 1.0, %v267_v39  ;;  %v227_v47 = vsel %vm159_vm6, 1.0, %v267_v39 }
  0xc7   :  { %v144_v44 = vmul.f32 8.0, %v143_v38  ;;  %v156_v45 = vadd.f32 %v226_v43, %v225_v40  ;;  %v157_v46 = vsub.f32 0.0, %v152_v42  ;;  %vm165_vm7 = vcmp.le.f32.partialorder %v224_v36, -1.0 }
  0xc8   :  { %v228_v55 = vsel %vm165_vm7, 1.0, %v267_v39 }
  0xc9   :  { %v145_v50 = vmul.f32 %v144_v44, %v143_v38  ;;  %v158_v51 = vsel %vm153_vm5, %v157_v46, %v152_v42  ;;  %v162_v52 = vadd.f32 %v227_v47, %v156_v45 }
  0xca   :  { %v163_v53 = vsub.f32 0.0, %v158_v51 }
  0xcb   :  { %v146_v54 = vsub.f32 %v145_v50, %v144_v44  ;;  %v168_v57 = vadd.f32 %v228_v55, %v162_v52 }
  0xcc   :  { %v164_v56 = vsel %vm159_vm6, %v163_v53, %v158_v51 }
  0xcd   :  { %v147_v60 = vadd.f32 1.0, %v146_v54  ;;  %v169_v61 = vsub.f32 0.0, %v164_v56  ;;  %v172_v1 = vmul.f32 2.0, %v168_v57 }
  0xcf   :  { %v170_v63 = vsel %vm165_vm7, %v169_v61, %v164_v56 }
  0xd0   :  { %v171_v0 = vmul.f32 %v170_v63, %v147_v60 }
  0xd2   :  { %v173_v3 = vsub.f32 %v171_v0, %v172_v1 }
  0xd4   :  { %v185_v5 = vsub.f32 %v173_v3, %v224_v36 }
  0xd6   :  { %v186_v7 = vmul.f32 %v229_v4, %v185_v5 }
  0xd8   :  { %v187_v9 = vmul.f32 0.001118747, %v186_v7 }
  0xda   :  { %v188_v11 = vadd.f32 %v224_v36, %v187_v9 }
  0xdc   :  { %v189_v13 = vmul.f32 %v188_v11, %v53_v12 }
  0xde   :  { %190 = vst [vmem:[#allocation2] sm:$0xff] %v189_v13 }
  0xdf   :  { %201 = dma.vmem_to_hbm [thread:$0]  %s197_s24, 128, %s199_s26, [#allocation3]  }
  0xe0   :  { %264 = dma.done.wait [#allocation3], 128  }
  0xe1   :  { %265 = vsyncadd [#allocation3], 4294967168 }
  0xe2   :  { %206 = vsyncpa [#allocation3], 1 }

</bundles_post_ra>
